<compile_context>
chip_gen: v5e
topology: v5e:2x2
jax: 0.10.0
libtpu: 0.0.40
codegen_flags: <defaults>
</compile_context>

<pallas_src>
import jax
import jax.numpy as jnp
from jax import lax
from jax.experimental import pallas as pl
from jax.experimental.pallas import tpu as pltpu


_LN_EPS = 1e-5  # PyTorch nn.LayerNorm default


def _gelu_exact(x):
    # nn.GELU() default = exact erf-based GELU.  (Switch to the tanh
    # approximation to route the transcendental to the EUP -- worth it on v5e
    # when bit-parity with the PyTorch reference is not required.)
    return 0.5 * x * (1.0 + lax.erf(x * 0.7071067811865475))


def _projection_head(x, w1, b1, w2, b2, gamma, beta):
    """ProjectionHead.forward (dropout = identity at inference).

    MXU operands are cast to bf16; accumulation stays f32.
    """
    projected = jnp.dot(x.astype(jnp.bfloat16), w1.astype(jnp.bfloat16),
                        preferred_element_type=jnp.float32) + b1          # (B, P)
    h = _gelu_exact(projected)
    h = jnp.dot(h.astype(jnp.bfloat16), w2.astype(jnp.bfloat16),
                preferred_element_type=jnp.float32) + b2                  # (B, P)
    y = h + projected
    # Single-pass LayerNorm statistics: var = E[y^2] - mean^2 (both lane-axis
    # reductions depend only on y, shortening the dependency chain).
    inv_p = 1.0 / y.shape[-1]
    mean = jnp.sum(y, axis=-1, keepdims=True) * inv_p
    mean_sq = jnp.sum(y * y, axis=-1, keepdims=True) * inv_p
    var = mean_sq - mean * mean
    y = (y - mean) * lax.rsqrt(var + _LN_EPS)
    return y * gamma + beta


def make_clip_forward_kernel(temperature, batch):
    temperature = float(temperature)
    inv_t = 1.0 / temperature
    half_t = 0.5 * temperature
    inv_2b = 1.0 / (2.0 * float(batch))

    def kernel(img_feat_ref, txt_feat_ref, iw1_ref, iw2_ref,
               tw1_ref, tw2_ref, vec_ref, loss_ref):
        # vec_ref packs the eight (1, P) parameter vectors into one (8, P)
        # slab (one DMA / one VMEM tile):
        #   rows 0..3 : image head  b1, b2, gamma, beta
        #   rows 4..7 : text head   b1, b2, gamma, beta
        vec = vec_ref[...]
        ib1, ib2, ig, ibeta = vec[0:1], vec[1:2], vec[2:3], vec[3:4]
        tb1, tb2, tg, tbeta = vec[4:5], vec[5:6], vec[6:7], vec[7:8]

        # ---- projection heads (fused) ------------------------------------
        img = _projection_head(img_feat_ref[...], iw1_ref[...], ib1,
                               iw2_ref[...], ib2, ig, ibeta)              # (B, P) f32
        txt = _projection_head(txt_feat_ref[...], tw1_ref[...], tb1,
                               tw2_ref[...], tb2, tg, tbeta)              # (B, P) f32

        img_b = img.astype(jnp.bfloat16)
        txt_b = txt.astype(jnp.bfloat16)

        # ---- contrastive loss --------------------------------------------
        # logits = text @ image.T / T
        logits = jnp.einsum("ip,jp->ij", txt_b, img_b,
                            preferred_element_type=jnp.float32) * inv_t   # (B, B)

        # img@img.T + txt@txt.T fused into ONE matmul: concatenate the two
        # embeddings along the contraction axis (K = 2P).
        cat = jnp.concatenate([img_b, txt_b], axis=-1)                    # (B, 2P)
        sim = jnp.einsum("ip,jp->ij", cat, cat,
                         preferred_element_type=jnp.float32) * half_t     # (B, B)

        # targets = softmax(sim, dim=-1)   (lane-axis reductions)
        m = jnp.max(sim, axis=-1, keepdims=True)
        e = jnp.exp(sim - m)
        z = jnp.sum(e, axis=-1, keepdims=True)
        targets = e / z                                                   # (B, B)

        # Row-wise LSE of logits (lane axis) for the text-direction CE, and
        # column-wise LSE of logits (sublane axis) for the image-direction CE
        # -- the column LSE replaces the old logits^T matmul + transposes.
        lm = jnp.max(logits, axis=-1, keepdims=True)
        lse_row = lm + jnp.log(jnp.sum(jnp.exp(logits - lm),
                                       axis=-1, keepdims=True))           # (B, 1)
        cm = jnp.max(logits, axis=0, keepdims=True)
        lse_col = cm + jnp.log(jnp.sum(jnp.exp(logits - cm),
                                       axis=0, keepdims=True))            # (1, B)

        # Shared term: sum_{i,j} targets[i,j] * logits[i,j]
        prod_rows = jnp.sum(targets * logits, axis=-1, keepdims=True)     # (B, 1)
        tl_dot = jnp.sum(prod_rows, axis=0, keepdims=True)                # (1, 1)

        # sum_i text_loss[i]   = sum_i lse_row[i] - tl_dot
        #   (rows of targets sum to 1, softmax axis=-1)
        sum_lse = jnp.sum(lse_row, axis=0, keepdims=True)                 # (1, 1)

        # sum_i images_loss[i] = sum_i colsum(targets)[i] * col_lse[i] - tl_dot
        col_t = jnp.sum(targets, axis=0, keepdims=True)                   # (1, B)
        img_second = jnp.sum(col_t * lse_col, axis=-1, keepdims=True)     # (1, 1)

        # loss.mean() = (sum_text + sum_image) / (2 * B)
        loss_ref[...] = (sum_lse + img_second - 2.0 * tl_dot) * inv_2b    # (1, 1)

    return kernel


def clip_forward(image_features, text_features, image_params, text_params,
                 temperature):
    B, e_img = image_features.shape
    _, e_txt = text_features.shape
    P = image_params["w1"].shape[1]

    # Pack the eight (1, P) bias / LayerNorm vectors into one (8, P) slab:
    # one input DMA (exactly one (8,128) tile at P=128) instead of eight
    # padded ones.  Input count drops from 14 to 7.
    vec_slab = jnp.concatenate(
        [image_params["b1"], image_params["b2"],
         image_params["gamma"], image_params["beta"],
         text_params["b1"], text_params["b2"],
         text_params["gamma"], text_params["beta"]], axis=0)              # (8, P)

    def full(shape):
        return pl.BlockSpec(shape, lambda i: (0,) * len(shape))

    loss = pl.pallas_call(
        make_clip_forward_kernel(temperature, B),
        out_shape=jax.ShapeDtypeStruct((1, 1), jnp.float32),
        grid=(1,),
        in_specs=[
            full((B, e_img)),      # image features
            full((B, e_txt)),      # text features
            full((e_img, P)),      # image head w1
            full((P, P)),          # image head w2
            full((e_txt, P)),      # text head  w1
            full((P, P)),          # text head  w2
            full((8, P)),          # packed b1/b2/gamma/beta for both heads
        ],
        out_specs=pl.BlockSpec((1, 1), lambda i: (0, 0)),
        compiler_params=pltpu.CompilerParams(
            dimension_semantics=("arbitrary",)),
    )(image_features, text_features,
      image_params["w1"], image_params["w2"],
      text_params["w1"], text_params["w2"], vec_slab)
    return loss[0, 0]


# ----------------------- pure-JAX reference (PyTorch spec) ------------------
def clip_forward_reference(image_features, text_features, image_params,
                           text_params, temperature):
    def head(x, p):
        projected = x @ p["w1"] + p["b1"]
        h = _gelu_exact(projected)
        h = h @ p["w2"] + p["b2"]
        y = h + projected
        mean = y.mean(-1, keepdims=True)
        var = ((y - mean) ** 2).mean(-1, keepdims=True)
        y = (y - mean) / jnp.sqrt(var + _LN_EPS)
        return y * p["gamma"] + p["beta"]

    img = head(image_features, image_params)
    txt = head(text_features, text_params)
    logits = txt @ img.T / temperature
    targets = jax.nn.softmax((img @ img.T + txt @ txt.T) / 2 * temperature,
                             axis=-1)
    text_loss = (-targets * jax.nn.log_softmax(logits, axis=-1)).sum(1)
    images_loss = (-targets.T * jax.nn.log_softmax(logits.T, axis=-1)).sum(1)
    return ((images_loss + text_loss) / 2.0).mean()


if __name__ == "__main__":
    B = 8              # batch
    IMAGE_EMB = 64     # image encoder output dim
    TEXT_EMB = 96      # text encoder output dim
    PROJ_DIM = 128     # config['model']['projection_dim']
    TEMPERATURE = 1.0  # config['model']['temperature']

    key = jax.random.PRNGKey(0)
    k_img, k_txt, k_ip, k_tp = jax.random.split(key, 4)

    # Encoder outputs (stand-ins for ImageEncoder / TextEncoder results).
    image_features = jax.random.normal(k_img, (B, IMAGE_EMB), jnp.float32)
    text_features = jax.random.normal(k_txt, (B, TEXT_EMB), jnp.float32)

    def init_projection_head(kbase, emb_dim, proj_dim):
        k1, k2 = jax.random.split(kbase)
        return dict(
            w1=jax.random.normal(k1, (emb_dim, proj_dim), jnp.float32) * 0.02,
            b1=jnp.zeros((1, proj_dim), jnp.float32),
            w2=jax.random.normal(k2, (proj_dim, proj_dim), jnp.float32) * 0.02,
            b2=jnp.zeros((1, proj_dim), jnp.float32),
            gamma=jnp.ones((1, proj_dim), jnp.float32),
            beta=jnp.zeros((1, proj_dim), jnp.float32),
        )

    image_params = init_projection_head(k_ip, IMAGE_EMB, PROJ_DIM)
    text_params = init_projection_head(k_tp, TEXT_EMB, PROJ_DIM)

    loss = clip_forward(image_features, text_features,
                        image_params, text_params, TEMPERATURE)
    jax.block_until_ready(loss)

    # Loose-tolerance sanity check vs the pure-JAX f32 reference (loose
    # because the MXU operands are bf16).
    ref = clip_forward_reference(image_features, text_features,
                                 image_params, text_params, TEMPERATURE)
    lv, rv = float(loss), float(ref)
    if not bool(jnp.isfinite(loss)) or abs(lv - rv) > 0.05 * abs(rv) + 0.1:
        raise SystemExit(f"MISMATCH: pallas={lv} ref={rv}")

    print("KERNEL_OK")
</pallas_src>

<mosaic_0001>
module attributes {stable_mosaic.version = 11 : i64} {
  func.func @kernel(%arg0: i32, %arg1: memref<8x64xf32, #tpu.memory_space<vmem>>, %arg2: memref<8x96xf32, #tpu.memory_space<vmem>>, %arg3: memref<64x128xf32, #tpu.memory_space<vmem>>, %arg4: memref<128x128xf32, #tpu.memory_space<vmem>>, %arg5: memref<96x128xf32, #tpu.memory_space<vmem>>, %arg6: memref<128x128xf32, #tpu.memory_space<vmem>>, %arg7: memref<8x128xf32, #tpu.memory_space<vmem>>, %arg8: memref<1x1xf32, #tpu.memory_space<vmem>>) attributes {dimension_semantics = [#tpu.dimension_semantics<arbitrary>], iteration_bounds = array<i64: 1>, scalar_prefetch = 0 : i64, scratch_operands = 0 : i64, tpu.core_type = #tpu.core_type<tc>, window_params = [{pipeline_mode = #tpu.pipeline_mode<synchronous>, transform_indices = @transform_0, window_bounds = array<i64: 8, 64>}, {pipeline_mode = #tpu.pipeline_mode<synchronous>, transform_indices = @transform_1, window_bounds = array<i64: 8, 96>}, {pipeline_mode = #tpu.pipeline_mode<synchronous>, transform_indices = @transform_2, window_bounds = array<i64: 64, 128>}, {pipeline_mode = #tpu.pipeline_mode<synchronous>, transform_indices = @transform_3, window_bounds = array<i64: 128, 128>}, {pipeline_mode = #tpu.pipeline_mode<synchronous>, transform_indices = @transform_4, window_bounds = array<i64: 96, 128>}, {pipeline_mode = #tpu.pipeline_mode<synchronous>, transform_indices = @transform_5, window_bounds = array<i64: 128, 128>}, {pipeline_mode = #tpu.pipeline_mode<synchronous>, transform_indices = @transform_6, window_bounds = array<i64: 8, 128>}, {pipeline_mode = #tpu.pipeline_mode<synchronous>, transform_indices = @transform_7, window_bounds = array<i64: 1, 1>}]} {
    %c0 = arith.constant 0 : index
    %c0_0 = arith.constant 0 : index
    %0 = vector.load %arg7[%c0, %c0_0] : memref<8x128xf32, #tpu.memory_space<vmem>>, vector<8x128xf32>
    %1 = vector.extract_strided_slice %0 {offsets = [0, 0], sizes = [1, 128], strides = [1, 1]} : vector<8x128xf32> to vector<1x128xf32>
    %2 = vector.extract_strided_slice %0 {offsets = [1, 0], sizes = [1, 128], strides = [1, 1]} : vector<8x128xf32> to vector<1x128xf32>
    %3 = vector.extract_strided_slice %0 {offsets = [2, 0], sizes = [1, 128], strides = [1, 1]} : vector<8x128xf32> to vector<1x128xf32>
    %4 = vector.extract_strided_slice %0 {offsets = [3, 0], sizes = [1, 128], strides = [1, 1]} : vector<8x128xf32> to vector<1x128xf32>
    %5 = vector.extract_strided_slice %0 {offsets = [4, 0], sizes = [1, 128], strides = [1, 1]} : vector<8x128xf32> to vector<1x128xf32>
    %6 = vector.extract_strided_slice %0 {offsets = [5, 0], sizes = [1, 128], strides = [1, 1]} : vector<8x128xf32> to vector<1x128xf32>
    %7 = vector.extract_strided_slice %0 {offsets = [6, 0], sizes = [1, 128], strides = [1, 1]} : vector<8x128xf32> to vector<1x128xf32>
    %8 = vector.extract_strided_slice %0 {offsets = [7, 0], sizes = [1, 128], strides = [1, 1]} : vector<8x128xf32> to vector<1x128xf32>
    %c0_1 = arith.constant 0 : index
    %c0_2 = arith.constant 0 : index
    %9 = vector.load %arg1[%c0_1, %c0_2] : memref<8x64xf32, #tpu.memory_space<vmem>>, vector<8x64xf32>
    %c0_3 = arith.constant 0 : index
    %c0_4 = arith.constant 0 : index
    %10 = vector.load %arg3[%c0_3, %c0_4] : memref<64x128xf32, #tpu.memory_space<vmem>>, vector<64x128xf32>
    %c0_5 = arith.constant 0 : index
    %c0_6 = arith.constant 0 : index
    %11 = vector.load %arg4[%c0_5, %c0_6] : memref<128x128xf32, #tpu.memory_space<vmem>>, vector<128x128xf32>
    %12 = arith.truncf %9 : vector<8x64xf32> to vector<8x64xbf16>
    %13 = arith.truncf %10 : vector<64x128xf32> to vector<64x128xbf16>
    %cst = arith.constant dense<0.000000e+00> : vector<8x128xf32>
    %14 = tpu.matmul %12, %13, %cst {dimension_numbers = #tpu.dot_dimension_numbers<[1], [0], [0], [1], [0, 0, 1, 1], [], []>} : vector<8x64xbf16>, vector<64x128xbf16>, vector<8x128xf32> -> vector<8x128xf32>
    %15 = vector.broadcast %1 : vector<1x128xf32> to vector<8x128xf32>
    %16 = arith.addf %14, %15 : vector<8x128xf32>
    %cst_7 = arith.constant 5.000000e-01 : f32
    %17 = vector.broadcast %cst_7 : f32 to vector<8x128xf32>
    %18 = arith.mulf %17, %16 : vector<8x128xf32>
    %cst_8 = arith.constant 0.707106769 : f32
    %19 = vector.broadcast %cst_8 : f32 to vector<8x128xf32>
    %20 = arith.mulf %16, %19 : vector<8x128xf32>
    %21 = math.erf %20 : vector<8x128xf32>
    %cst_9 = arith.constant 1.000000e+00 : f32
    %22 = vector.broadcast %cst_9 : f32 to vector<8x128xf32>
    %23 = arith.addf %22, %21 : vector<8x128xf32>
    %24 = arith.mulf %18, %23 : vector<8x128xf32>
    %25 = arith.truncf %24 : vector<8x128xf32> to vector<8x128xbf16>
    %26 = arith.truncf %11 : vector<128x128xf32> to vector<128x128xbf16>
    %cst_10 = arith.constant dense<0.000000e+00> : vector<8x128xf32>
    %27 = tpu.matmul %25, %26, %cst_10 {dimension_numbers = #tpu.dot_dimension_numbers<[1], [0], [0], [1], [0, 0, 1, 1], [], []>} : vector<8x128xbf16>, vector<128x128xbf16>, vector<8x128xf32> -> vector<8x128xf32>
    %28 = vector.broadcast %2 : vector<1x128xf32> to vector<8x128xf32>
    %29 = arith.addf %27, %28 : vector<8x128xf32>
    %30 = arith.addf %29, %16 : vector<8x128xf32>
    %cst_11 = arith.constant dense<0.000000e+00> : vector<8xf32>
    %31 = vector.multi_reduction <add>, %30, %cst_11 [1] : vector<8x128xf32> to vector<8xf32>
    %32 = vector.shape_cast %31 : vector<8xf32> to vector<8x1xf32>
    %cst_12 = arith.constant 7.812500e-03 : f32
    %33 = vector.broadcast %cst_12 : f32 to vector<8x1xf32>
    %34 = arith.mulf %32, %33 : vector<8x1xf32>
    %35 = arith.mulf %30, %30 : vector<8x128xf32>
    %cst_13 = arith.constant dense<0.000000e+00> : vector<8xf32>
    %36 = vector.multi_reduction <add>, %35, %cst_13 [1] : vector<8x128xf32> to vector<8xf32>
    %37 = vector.shape_cast %36 : vector<8xf32> to vector<8x1xf32>
    %cst_14 = arith.constant 7.812500e-03 : f32
    %38 = vector.broadcast %cst_14 : f32 to vector<8x1xf32>
    %39 = arith.mulf %37, %38 : vector<8x1xf32>
    %40 = arith.mulf %34, %34 : vector<8x1xf32>
    %41 = arith.subf %39, %40 : vector<8x1xf32>
    %42 = vector.broadcast %34 : vector<8x1xf32> to vector<8x128xf32>
    %43 = arith.subf %30, %42 : vector<8x128xf32>
    %cst_15 = arith.constant 9.99999974E-6 : f32
    %44 = vector.broadcast %cst_15 : f32 to vector<8x1xf32>
    %45 = arith.addf %41, %44 : vector<8x1xf32>
    %46 = math.rsqrt %45 : vector<8x1xf32>
    %47 = vector.broadcast %46 : vector<8x1xf32> to vector<8x128xf32>
    %48 = arith.mulf %43, %47 : vector<8x128xf32>
    %49 = vector.broadcast %3 : vector<1x128xf32> to vector<8x128xf32>
    %50 = arith.mulf %48, %49 : vector<8x128xf32>
    %51 = vector.broadcast %4 : vector<1x128xf32> to vector<8x128xf32>
    %52 = arith.addf %50, %51 : vector<8x128xf32>
    %c0_16 = arith.constant 0 : index
    %c0_17 = arith.constant 0 : index
    %53 = vector.load %arg2[%c0_16, %c0_17] : memref<8x96xf32, #tpu.memory_space<vmem>>, vector<8x96xf32>
    %c0_18 = arith.constant 0 : index
    %c0_19 = arith.constant 0 : index
    %54 = vector.load %arg5[%c0_18, %c0_19] : memref<96x128xf32, #tpu.memory_space<vmem>>, vector<96x128xf32>
    %c0_20 = arith.constant 0 : index
    %c0_21 = arith.constant 0 : index
    %55 = vector.load %arg6[%c0_20, %c0_21] : memref<128x128xf32, #tpu.memory_space<vmem>>, vector<128x128xf32>
    %56 = arith.truncf %53 : vector<8x96xf32> to vector<8x96xbf16>
    %57 = arith.truncf %54 : vector<96x128xf32> to vector<96x128xbf16>
    %cst_22 = arith.constant dense<0.000000e+00> : vector<8x128xf32>
    %58 = tpu.matmul %56, %57, %cst_22 {dimension_numbers = #tpu.dot_dimension_numbers<[1], [0], [0], [1], [0, 0, 1, 1], [], []>} : vector<8x96xbf16>, vector<96x128xbf16>, vector<8x128xf32> -> vector<8x128xf32>
    %59 = vector.broadcast %5 : vector<1x128xf32> to vector<8x128xf32>
    %60 = arith.addf %58, %59 : vector<8x128xf32>
    %cst_23 = arith.constant 5.000000e-01 : f32
    %61 = vector.broadcast %cst_23 : f32 to vector<8x128xf32>
    %62 = arith.mulf %61, %60 : vector<8x128xf32>
    %cst_24 = arith.constant 0.707106769 : f32
    %63 = vector.broadcast %cst_24 : f32 to vector<8x128xf32>
    %64 = arith.mulf %60, %63 : vector<8x128xf32>
    %65 = math.erf %64 : vector<8x128xf32>
    %cst_25 = arith.constant 1.000000e+00 : f32
    %66 = vector.broadcast %cst_25 : f32 to vector<8x128xf32>
    %67 = arith.addf %66, %65 : vector<8x128xf32>
    %68 = arith.mulf %62, %67 : vector<8x128xf32>
    %69 = arith.truncf %68 : vector<8x128xf32> to vector<8x128xbf16>
    %70 = arith.truncf %55 : vector<128x128xf32> to vector<128x128xbf16>
    %cst_26 = arith.constant dense<0.000000e+00> : vector<8x128xf32>
    %71 = tpu.matmul %69, %70, %cst_26 {dimension_numbers = #tpu.dot_dimension_numbers<[1], [0], [0], [1], [0, 0, 1, 1], [], []>} : vector<8x128xbf16>, vector<128x128xbf16>, vector<8x128xf32> -> vector<8x128xf32>
    %72 = vector.broadcast %6 : vector<1x128xf32> to vector<8x128xf32>
    %73 = arith.addf %71, %72 : vector<8x128xf32>
    %74 = arith.addf %73, %60 : vector<8x128xf32>
    %cst_27 = arith.constant dense<0.000000e+00> : vector<8xf32>
    %75 = vector.multi_reduction <add>, %74, %cst_27 [1] : vector<8x128xf32> to vector<8xf32>
    %76 = vector.shape_cast %75 : vector<8xf32> to vector<8x1xf32>
    %cst_28 = arith.constant 7.812500e-03 : f32
    %77 = vector.broadcast %cst_28 : f32 to vector<8x1xf32>
    %78 = arith.mulf %76, %77 : vector<8x1xf32>
    %79 = arith.mulf %74, %74 : vector<8x128xf32>
    %cst_29 = arith.constant dense<0.000000e+00> : vector<8xf32>
    %80 = vector.multi_reduction <add>, %79, %cst_29 [1] : vector<8x128xf32> to vector<8xf32>
    %81 = vector.shape_cast %80 : vector<8xf32> to vector<8x1xf32>
    %cst_30 = arith.constant 7.812500e-03 : f32
    %82 = vector.broadcast %cst_30 : f32 to vector<8x1xf32>
    %83 = arith.mulf %81, %82 : vector<8x1xf32>
    %84 = arith.mulf %78, %78 : vector<8x1xf32>
    %85 = arith.subf %83, %84 : vector<8x1xf32>
    %86 = vector.broadcast %78 : vector<8x1xf32> to vector<8x128xf32>
    %87 = arith.subf %74, %86 : vector<8x128xf32>
    %cst_31 = arith.constant 9.99999974E-6 : f32
    %88 = vector.broadcast %cst_31 : f32 to vector<8x1xf32>
    %89 = arith.addf %85, %88 : vector<8x1xf32>
    %90 = math.rsqrt %89 : vector<8x1xf32>
    %91 = vector.broadcast %90 : vector<8x1xf32> to vector<8x128xf32>
    %92 = arith.mulf %87, %91 : vector<8x128xf32>
    %93 = vector.broadcast %7 : vector<1x128xf32> to vector<8x128xf32>
    %94 = arith.mulf %92, %93 : vector<8x128xf32>
    %95 = vector.broadcast %8 : vector<1x128xf32> to vector<8x128xf32>
    %96 = arith.addf %94, %95 : vector<8x128xf32>
    %97 = arith.truncf %52 : vector<8x128xf32> to vector<8x128xbf16>
    %98 = arith.truncf %96 : vector<8x128xf32> to vector<8x128xbf16>
    "tpu.trace_start"() <{level = 10 : i32, message = "ip,jp->ij"}> : () -> ()
    %cst_32 = arith.constant dense<0.000000e+00> : vector<8x8xf32>
    %99 = tpu.matmul %98, %97, %cst_32 {dimension_numbers = #tpu.dot_dimension_numbers<[1], [1], [0], [0], [0, 0, 1, 0], [], []>} : vector<8x128xbf16>, vector<8x128xbf16>, vector<8x8xf32> -> vector<8x8xf32>
    "tpu.trace_stop"() : () -> ()
    %cst_33 = arith.constant 1.000000e+00 : f32
    %100 = vector.broadcast %cst_33 : f32 to vector<8x8xf32>
    %101 = arith.mulf %99, %100 : vector<8x8xf32>
    %102 = tpu.concatenate %97, %98 in 1 : vector<8x128xbf16>, vector<8x128xbf16> -> vector<8x256xbf16>
    "tpu.trace_start"() <{level = 10 : i32, message = "ip,jp->ij"}> : () -> ()
    %cst_34 = arith.constant dense<0.000000e+00> : vector<8x8xf32>
    %103 = tpu.matmul %102, %102, %cst_34 {dimension_numbers = #tpu.dot_dimension_numbers<[1], [1], [0], [0], [0, 0, 1, 0], [], []>} : vector<8x256xbf16>, vector<8x256xbf16>, vector<8x8xf32> -> vector<8x8xf32>
    "tpu.trace_stop"() : () -> ()
    %cst_35 = arith.constant 5.000000e-01 : f32
    %104 = vector.broadcast %cst_35 : f32 to vector<8x8xf32>
    %105 = arith.mulf %103, %104 : vector<8x8xf32>
    %cst_36 = arith.constant dense<0xFF800000> : vector<8xf32>
    %106 = vector.multi_reduction <maximumf>, %105, %cst_36 [1] : vector<8x8xf32> to vector<8xf32>
    %107 = vector.shape_cast %106 : vector<8xf32> to vector<8x1xf32>
    %108 = vector.broadcast %107 : vector<8x1xf32> to vector<8x8xf32>
    %109 = arith.subf %105, %108 : vector<8x8xf32>
    %110 = math.exp %109 : vector<8x8xf32>
    %cst_37 = arith.constant dense<0.000000e+00> : vector<8xf32>
    %111 = vector.multi_reduction <add>, %110, %cst_37 [1] : vector<8x8xf32> to vector<8xf32>
    %112 = vector.shape_cast %111 : vector<8xf32> to vector<8x1xf32>
    %113 = vector.broadcast %112 : vector<8x1xf32> to vector<8x8xf32>
    %114 = arith.divf %110, %113 : vector<8x8xf32>
    %cst_38 = arith.constant dense<0xFF800000> : vector<8xf32>
    %115 = vector.multi_reduction <maximumf>, %101, %cst_38 [1] : vector<8x8xf32> to vector<8xf32>
    %116 = vector.shape_cast %115 : vector<8xf32> to vector<8x1xf32>
    %117 = vector.broadcast %116 : vector<8x1xf32> to vector<8x8xf32>
    %118 = arith.subf %101, %117 : vector<8x8xf32>
    %119 = math.exp %118 : vector<8x8xf32>
    %cst_39 = arith.constant dense<0.000000e+00> : vector<8xf32>
    %120 = vector.multi_reduction <add>, %119, %cst_39 [1] : vector<8x8xf32> to vector<8xf32>
    %121 = vector.shape_cast %120 : vector<8xf32> to vector<8x1xf32>
    %122 = math.log %121 : vector<8x1xf32>
    %123 = arith.addf %116, %122 : vector<8x1xf32>
    %cst_40 = arith.constant dense<0xFF800000> : vector<8xf32>
    %124 = vector.multi_reduction <maximumf>, %101, %cst_40 [0] : vector<8x8xf32> to vector<8xf32>
    %125 = vector.shape_cast %124 : vector<8xf32> to vector<1x8xf32>
    %126 = vector.broadcast %125 : vector<1x8xf32> to vector<8x8xf32>
    %127 = arith.subf %101, %126 : vector<8x8xf32>
    %128 = math.exp %127 : vector<8x8xf32>
    %cst_41 = arith.constant dense<0.000000e+00> : vector<8xf32>
    %129 = vector.multi_reduction <add>, %128, %cst_41 [0] : vector<8x8xf32> to vector<8xf32>
    %130 = vector.shape_cast %129 : vector<8xf32> to vector<1x8xf32>
    %131 = math.log %130 : vector<1x8xf32>
    %132 = arith.addf %125, %131 : vector<1x8xf32>
    %133 = arith.mulf %114, %101 : vector<8x8xf32>
    %cst_42 = arith.constant dense<0.000000e+00> : vector<8xf32>
    %134 = vector.multi_reduction <add>, %133, %cst_42 [1] : vector<8x8xf32> to vector<8xf32>
    %135 = vector.shape_cast %134 : vector<8xf32> to vector<8x1xf32>
    %cst_43 = arith.constant dense<0.000000e+00> : vector<1xf32>
    %136 = vector.multi_reduction <add>, %135, %cst_43 [0] : vector<8x1xf32> to vector<1xf32>
    %137 = vector.shape_cast %136 : vector<1xf32> to vector<1x1xf32>
    %cst_44 = arith.constant dense<0.000000e+00> : vector<1xf32>
    %138 = vector.multi_reduction <add>, %123, %cst_44 [0] : vector<8x1xf32> to vector<1xf32>
    %139 = vector.shape_cast %138 : vector<1xf32> to vector<1x1xf32>
    %cst_45 = arith.constant dense<0.000000e+00> : vector<8xf32>
    %140 = vector.multi_reduction <add>, %114, %cst_45 [0] : vector<8x8xf32> to vector<8xf32>
    %141 = vector.shape_cast %140 : vector<8xf32> to vector<1x8xf32>
    %142 = arith.mulf %141, %132 : vector<1x8xf32>
    %cst_46 = arith.constant dense<0.000000e+00> : vector<1xf32>
    %143 = vector.multi_reduction <add>, %142, %cst_46 [1] : vector<1x8xf32> to vector<1xf32>
    %144 = vector.shape_cast %143 : vector<1xf32> to vector<1x1xf32>
    %145 = arith.addf %139, %144 : vector<1x1xf32>
    %cst_47 = arith.constant 2.000000e+00 : f32
    %146 = vector.broadcast %cst_47 : f32 to vector<1x1xf32>
    %147 = arith.mulf %146, %137 : vector<1x1xf32>
    %148 = arith.subf %145, %147 : vector<1x1xf32>
    %cst_48 = arith.constant 6.250000e-02 : f32
    %149 = vector.broadcast %cst_48 : f32 to vector<1x1xf32>
    %150 = arith.mulf %148, %149 : vector<1x1xf32>
    %c0_49 = arith.constant 0 : index
    %c0_50 = arith.constant 0 : index
    %151 = vector.load %arg8[%c0_49, %c0_50] : memref<1x1xf32, #tpu.memory_space<vmem>>, vector<1x1xf32>
    tpu.vector_store %arg8[%c0_49, %c0_50], %150 {strides = array<i32>} : memref<1x1xf32, #tpu.memory_space<vmem>>, vector<1x1xf32>,
    return
  }
  func.func @transform_0(%arg0: i32) -> (i32, i32) {
    %c0_i32 = arith.constant 0 : i32
    %c0_i32_0 = arith.constant 0 : i32
    %c0_i32_1 = arith.constant 0 : i32
    return %c0_i32, %c0_i32_0 : i32, i32
  }
  func.func @transform_1(%arg0: i32) -> (i32, i32) {
    %c0_i32 = arith.constant 0 : i32
    %c0_i32_0 = arith.constant 0 : i32
    %c0_i32_1 = arith.constant 0 : i32
    return %c0_i32, %c0_i32_0 : i32, i32
  }
  func.func @transform_2(%arg0: i32) -> (i32, i32) {
    %c0_i32 = arith.constant 0 : i32
    %c0_i32_0 = arith.constant 0 : i32
    %c0_i32_1 = arith.constant 0 : i32
    return %c0_i32, %c0_i32_0 : i32, i32
  }
  func.func @transform_3(%arg0: i32) -> (i32, i32) {
    %c0_i32 = arith.constant 0 : i32
    %c0_i32_0 = arith.constant 0 : i32
    %c0_i32_1 = arith.constant 0 : i32
    return %c0_i32, %c0_i32_0 : i32, i32
  }
  func.func @transform_4(%arg0: i32) -> (i32, i32) {
    %c0_i32 = arith.constant 0 : i32
    %c0_i32_0 = arith.constant 0 : i32
    %c0_i32_1 = arith.constant 0 : i32
    return %c0_i32, %c0_i32_0 : i32, i32
  }
  func.func @transform_5(%arg0: i32) -> (i32, i32) {
    %c0_i32 = arith.constant 0 : i32
    %c0_i32_0 = arith.constant 0 : i32
    %c0_i32_1 = arith.constant 0 : i32
    return %c0_i32, %c0_i32_0 : i32, i32
  }
  func.func @transform_6(%arg0: i32) -> (i32, i32) {
    %c0_i32 = arith.constant 0 : i32
    %c0_i32_0 = arith.constant 0 : i32
    %c0_i32_1 = arith.constant 0 : i32
    return %c0_i32, %c0_i32_0 : i32, i32
  }
  func.func @transform_7(%arg0: i32) -> (i32, i32) {
    %c0_i32 = arith.constant 0 : i32
    %c0_i32_0 = arith.constant 0 : i32
    %c0_i32_1 = arith.constant 0 : i32
    return %c0_i32, %c0_i32_0 : i32, i32
  }
}

</mosaic_0001>

<bundles_post_ra>
// kernel: tpu_custom_call.1
= control target key start
LH: loop header
LB: loop body
LE: loop exit
PB: predicated region body
PF: predicated region fallthrough
CT: control target
= control target key end

     0   :  { %12 = vsyncpa [#allocation3], 0  ;;  %s949_s0 = inlined_call_operand.hbm [shape: f32[8,64], index: 0, kind: input, shape index: {}]   ;;  %s950_s1 = inlined_call_operand.hbm [shape: f32[8,96], index: 1, kind: input, shape index: {}]   ;;  %s951_s2 = inlined_call_operand.hbm [shape: f32[64,128], index: 2, kind: input, shape index: {}]   ;;  %s952_s3 = inlined_call_operand.hbm [shape: f32[128,128], index: 3, kind: input, shape index: {}]   ;;  %s953_s4 = inlined_call_operand.hbm [shape: f32[96,128], index: 4, kind: input, shape index: {}]   ;;  %s954_s5 = inlined_call_operand.hbm [shape: f32[128,128], index: 5, kind: input, shape index: {}]   ;;  %s955_s6 = inlined_call_operand.hbm [shape: f32[8,128], index: 6, kind: input, shape index: {}]   ;;  %s956_s7 = inlined_call_operand.hbm [shape: f32[1,1], index: 7, kind: output, shape index: {}]  }
   0x1   :  { %13 = vsyncpa [#allocation6], 0 }
   0x2   :  { %14 = vsyncpa [#allocation9], 0 }
   0x3   :  { %15 = vsyncpa [#allocation12], 0  ;;  %s33_s26 = sshll.u32 %s950_s1, 4  ;;  %s34_s26 = int_to_ptr.hbm [resolvable:$true] %s33_s26 }
   0x4   :  { %16 = vsyncpa [#allocation4], 0  ;;  %s809_s27 = smov [#allocation5]   ;;  %s56_s8 = sshll.u32 %s952_s3, 4  ;;  %s57_s8 = int_to_ptr.hbm [resolvable:$true] %s56_s8 }
   0x5   :  { %s35_s28 = sshll.u32 %s809_s27, 4  ;;  %s810_s9 = smov [#allocation8]   ;;  %s36_s28 = int_to_ptr.vmem [resolvable:$true] %s35_s28 }
   0x6   :  { %38 = dma.hbm_to_vmem [thread:$0]  %s34_s26, 128, %s36_s28, [#allocation6]  }
   0x7   :  { %s58_s10 = sshll.u32 %s810_s9, 4  ;;  %s82_s13 = sshll.u32 %s954_s5, 4  ;;  %s59_s10 = int_to_ptr.vmem [resolvable:$true] %s58_s10  ;;  %s83_s13 = int_to_ptr.hbm [resolvable:$true] %s82_s13 }
   0x8   :  { %s811_s1 = smov 128   ;;  %s812_s14 = smov 8  }
   0x9   :  { %64 = dma.hbm_to_vmem [thread:$0]  %s57_s8, 2048, %s59_s10, [#allocation9], %s811_s1, %s811_s1, %s812_s14  }
   0xa   :  { %s22_s17 = sshll.u32 %s949_s0, 4  ;;  %s813_s18 = smov [#allocation11]   ;;  %s23_s17 = int_to_ptr.hbm [resolvable:$true] %s22_s17 }
   0xb   :  { %s84_s19 = sshll.u32 %s813_s18, 4  ;;  %s814_s3 = smov [#allocation2]   ;;  %s85_s19 = int_to_ptr.vmem [resolvable:$true] %s84_s19 }
   0xc   :  { %90 = dma.hbm_to_vmem [thread:$0]  %s83_s13, 2048, %s85_s19, [#allocation12], %s811_s1, %s811_s1, %s812_s14  }
   0xd   :  { %s24_s20 = sshll.u32 %s814_s3, 4  ;;  %s43_s5 = sshll.u32 %s951_s2, 4  ;;  %s25_s20 = int_to_ptr.vmem [resolvable:$true] %s24_s20  ;;  %s44_s5 = int_to_ptr.hbm [resolvable:$true] %s43_s5 }
   0xe   :  { %27 = dma.hbm_to_vmem [thread:$0]  %s23_s17, 128, %s25_s20, [#allocation3]  }
   0xf   :  { %s69_s25 = sshll.u32 %s953_s4, 4  ;;  %s815_s26 = smov [#allocation7]   ;;  %s70_s25 = int_to_ptr.hbm [resolvable:$true] %s69_s25 }
  0x10   :  { %s45_s0 = sshll.u32 %s815_s26, 4  ;;  %s816_s27 = smov [#allocation10]   ;;  %s46_s0 = int_to_ptr.vmem [resolvable:$true] %s45_s0 }
  0x11   :  { %51 = dma.hbm_to_vmem [thread:$0]  %s44_s5, 1024, %s46_s0, [#allocation6], %s811_s1, %s811_s1, %s812_s14  }
  0x12   :  { %s71_s28 = sshll.u32 %s816_s27, 4  ;;  %s96_s8 = sshll.u32 %s955_s6, 4  ;;  %s72_s28 = int_to_ptr.vmem [resolvable:$true] %s71_s28  ;;  %s97_s8 = int_to_ptr.hbm [resolvable:$true] %s96_s8 }
  0x13   :  { %77 = dma.hbm_to_vmem [thread:$0]  %s70_s25, 1536, %s72_s28, [#allocation9], %s811_s1, %s811_s1, %s812_s14  }
  0x14   :  { %s817_s2 = smov [#allocation13]  }
  0x15   :  { %s98_s9 = sshll.u32 %s817_s2, 4  ;;  %s99_s9 = int_to_ptr.vmem [resolvable:$true] %s98_s9 }
  0x16   :  { %101 = dma.hbm_to_vmem [thread:$0]  %s97_s8, 128, %s99_s9, [#allocation12]  }
  0x17   :  { %799 = dma.done.wait [#allocation3], 128  }
  0x18   :  { %800 = vsyncadd [#allocation3], 4294967168 }
  0x19   :  { %801 = dma.done.wait [#allocation6], 1152  }
  0x1a   :  { %802 = vsyncadd [#allocation6], 4294966144 }
  0x1b   :  { %803 = dma.done.wait [#allocation9], 3584  }
  0x1c   :  { %804 = vsyncadd [#allocation9], 4294963712 }
  0x1d   :  { %805 = dma.done.wait [#allocation12], 2176  }
  0x1e   :  { %806 = vsyncadd [#allocation12], 4294965120  ;;  %v139_v0 = vld [vmem:[#allocation7 + $0x30] sm:$0xff]  ;;  %v140_v1 = vld [vmem:[#allocation7 + $0x38] sm:$0xff]  ;;  %vm163_vm0 = vcmask 523264   ;;  %vm311_vm1 = vcmask 785408  }
  0x1f   :  { %v285_v2 = vld [vmem:[#allocation10 + $0x50] sm:$0xff]  ;;  %v161_v3 = vpack.c.bf16 %v140_v1, %v139_v0  ;;  %v286_v4 = vld [vmem:[#allocation10 + $0x58] sm:$0xff]  ;;  %v137_v5 = vld [vmem:[#allocation7 + $0x20] sm:$0xff]  ;;  %s818_s4 = smov [#allocation14]   ;;  %s560_s12 = sshll.u32 %s956_s7, 4  ;;  %s561_s12 = int_to_ptr.hbm [resolvable:$true] %s560_s12 }
  0x20   :  { %v138_v6 = vld [vmem:[#allocation7 + $0x28] sm:$0xff]  ;;  %v309_v7 = vpack.c.bf16 %v286_v4, %v285_v2  ;;  %v283_v8 = vld [vmem:[#allocation10 + $0x40] sm:$0xff]  ;;  %v135_v12 = vld [vmem:[#allocation7 + $0x10] sm:$0xff]  ;;  %s558_s6 = sshll.u32 %s818_s4, 4  ;;  %s559_s6 = int_to_ptr.vmem [resolvable:$true] %s558_s6 }
  0x21   :  { %v284_v9 = vld [vmem:[#allocation10 + $0x48] sm:$0xff]  ;;  %171 = vmatpush.bf16.msra.mxu0 %v161_v3  ;;  %v160_v10 = vpack.c.bf16 %v138_v6, %v137_v5  ;;  %v136_v13 = vld [vmem:[#allocation7 + $0x18] sm:$0xff]  ;;  %v281_v14 = vld [vmem:[#allocation10 + $0x30] sm:$0xff] }
  0x22   :  { %317 = vmatpush.bf16.msra.mxu2 %v309_v7  ;;  %v308_v11 = vpack.c.bf16 %v284_v9, %v283_v8  ;;  %v282_v15 = vld [vmem:[#allocation10 + $0x38] sm:$0xff]  ;;  %v159_v16 = vpack.c.bf16 %v136_v13, %v135_v12  ;;  %v133_v18 = vld [vmem:[#allocation7] sm:$0xff]  ;;  %v134_v19 = vld [vmem:[#allocation7 + $0x8] sm:$0xff] }
  0x23   :  { %v307_v17 = vpack.c.bf16 %v282_v15, %v281_v14  ;;  %v279_v20 = vld [vmem:[#allocation10 + $0x20] sm:$0xff]  ;;  %v280_v21 = vld [vmem:[#allocation10 + $0x28] sm:$0xff]  ;;  %v158_v22 = vpack.c.bf16 %v134_v19, %v133_v18  ;;  %v132_v23 = vld [vmem:[#allocation2] sm:$0xff] }
  0x24   :  { %v306_v24 = vpack.c.bf16 %v280_v21, %v279_v20  ;;  %v277_v25 = vld [vmem:[#allocation10 + $0x10] sm:$0xff]  ;;  %v278_v26 = vld [vmem:[#allocation10 + $0x18] sm:$0xff]  ;;  %v157_v27 = vpack.c.bf16 %v132_v23, %v132_v23  ;;  %v275_v29 = vld [vmem:[#allocation10] sm:$0xff] }
  0x25   :  { %172 = vmatpush.bf16.msra.mxu0 %v160_v10  ;;  %v305_v28 = vpack.c.bf16 %v278_v26, %v277_v25  ;;  %v276_v30 = vld [vmem:[#allocation10 + $0x8] sm:$0xff]  ;;  %v274_v32 = vld [vmem:[#allocation5] sm:$0xff]  ;;  %v155_v34 = vld [vmem:[#allocation8 + $0x70] sm:$0xff] }
  0x26   :  { %318 = vmatpush.bf16.msra.mxu2 %v308_v11  ;;  %v304_v31 = vpack.c.bf16 %v276_v30, %v275_v29  ;;  %v303_v33 = vpack.c.bf16 %v274_v32, %v274_v32  ;;  %v156_v35 = vld [vmem:[#allocation8 + $0x78] sm:$0xff]  ;;  %v153_v36 = vld [vmem:[#allocation8 + $0x60] sm:$0xff]  ;;  %v154_v38 = vld [vmem:[#allocation8 + $0x68] sm:$0xff] }
  0x27   :  { %v232_v37 = vpack.c.bf16 %v156_v35, %v155_v34  ;;  %v301_v39 = vld [vmem:[#allocation11 + $0x70] sm:$0xff]  ;;  %v880_v40 = vld [vmem:[#allocation13] sm:$0xff]  ;;  %v231_v41 = vpack.c.bf16 %v154_v38, %v153_v36  ;;  %v302_v43 = vld [vmem:[#allocation11 + $0x78] sm:$0xff] }
  0x28   :  { %v151_v42 = vld [vmem:[#allocation8 + $0x50] sm:$0xff]  ;;  %v152_v44 = vld [vmem:[#allocation8 + $0x58] sm:$0xff]  ;;  %v380_v45 = vpack.c.bf16 %v302_v43, %v301_v39  ;;  %v299_v46 = vld [vmem:[#allocation11 + $0x60] sm:$0xff]  ;;  %v162_v48 = vperm.slane %v880_v40, 0 }
  0x29   :  { %173 = vmatpush.bf16.msra.mxu0 %v159_v16  ;;  %234 = vmatpush.bf16.msra.mxu1 %v232_v37  ;;  %v300_v47 = vld [vmem:[#allocation11 + $0x68] sm:$0xff]  ;;  %v230_v50 = vpack.c.bf16 %v152_v44, %v151_v42  ;;  %v297_v51 = vld [vmem:[#allocation11 + $0x50] sm:$0xff]  ;;  %v298_v52 = vld [vmem:[#allocation11 + $0x58] sm:$0xff] }
  0x2a   :  { %319 = vmatpush.bf16.msra.mxu2 %v307_v17  ;;  %382 = vmatpush.bf16.msra.mxu3 %v380_v45  ;;  %v379_v49 = vpack.c.bf16 %v300_v47, %v299_v46  ;;  %v149_v53 = vld [vmem:[#allocation8 + $0x40] sm:$0xff]  ;;  %v150_v54 = vld [vmem:[#allocation8 + $0x48] sm:$0xff]  ;;  %v378_v57 = vpack.c.bf16 %v298_v52, %v297_v51  ;;  %v147_v62 = vld [vmem:[#allocation8 + $0x30] sm:$0xff]  ;;  %v310_v17 = vperm.slane %v880_v40, 4 }
  0x2b   :  { %v229_v58 = vpack.c.bf16 %v150_v54, %v149_v53  ;;  %v295_v59 = vld [vmem:[#allocation11 + $0x40] sm:$0xff]  ;;  %v296_v60 = vld [vmem:[#allocation11 + $0x48] sm:$0xff]  ;;  %v148_v63 = vld [vmem:[#allocation8 + $0x38] sm:$0xff] }
  0x2c   :  { %v377_v1 = vpack.c.bf16 %v296_v60, %v295_v59  ;;  %v228_v2 = vpack.c.bf16 %v148_v63, %v147_v62  ;;  %v293_v3 = vld [vmem:[#allocation11 + $0x30] sm:$0xff]  ;;  %v294_v4 = vld [vmem:[#allocation11 + $0x38] sm:$0xff]  ;;  %v145_v6 = vld [vmem:[#allocation8 + $0x20] sm:$0xff] }
  0x2d   :  { %174 = vmatpush.bf16.msra.mxu0 %v158_v22  ;;  %235 = vmatpush.bf16.msra.mxu1 %v231_v41  ;;  %v146_v7 = vld [vmem:[#allocation8 + $0x28] sm:$0xff]  ;;  %v376_v9 = vpack.c.bf16 %v294_v4, %v293_v3  ;;  %v143_v13 = vld [vmem:[#allocation8 + $0x10] sm:$0xff]  ;;  %v144_v14 = vld [vmem:[#allocation8 + $0x18] sm:$0xff] }
  0x2e   :  { %320 = vmatpush.bf16.msra.mxu2 %v306_v24  ;;  %383 = vmatpush.bf16.msra.mxu3 %v379_v49  ;;  %v227_v12 = vpack.c.bf16 %v146_v7, %v145_v6  ;;  %v226_v20 = vpack.c.bf16 %v144_v14, %v143_v13  ;;  %v141_v22 = vld [vmem:[#allocation8] sm:$0xff]  ;;  %v142_v23 = vld [vmem:[#allocation8 + $0x8] sm:$0xff]  ;;  %v289_v41 = vld [vmem:[#allocation11 + $0x10] sm:$0xff] }
  0x2f   :  { %v225_v29 = vpack.c.bf16 %v142_v23, %v141_v22  ;;  %v291_v38 = vld [vmem:[#allocation11 + $0x20] sm:$0xff]  ;;  %v292_v39 = vld [vmem:[#allocation11 + $0x28] sm:$0xff]  ;;  %v290_v45 = vld [vmem:[#allocation11 + $0x18] sm:$0xff] }
  0x30   :  { %573 = vmatmul.msk.bf16.vlgmr.msra.gmra.mxu0 %vm163_vm0, %v157_v27  ;;  %v375_v44 = vpack.c.bf16 %v292_v39, %v291_v38  ;;  %v287_v52 = vld [vmem:[#allocation11] sm:$0xff]  ;;  %v288_v53 = vld [vmem:[#allocation11 + $0x8] sm:$0xff]  ;;  %vm464_vm0 = vcmask 64512  }
  0x31   :  { %236 = vmatpush.bf16.msra.mxu1 %v230_v50  ;;  %v374_v50 = vpack.c.bf16 %v290_v45, %v289_v41 }
  0x32   :  { %321 = vmatpush.bf16.msra.mxu2 %v305_v28  ;;  %384 = vmatpush.bf16.msra.mxu3 %v378_v57 }
  0x35   :  { %237 = vmatpush.bf16.msra.mxu1 %v229_v58  ;;  %v373_v58 = vpack.c.bf16 %v288_v53, %v287_v52  ;;  %v381_v53 = vperm.slane %v880_v40, 5 }
  0x36   :  { %322 = vmatpush.bf16.msra.mxu2 %v304_v31  ;;  %385 = vmatpush.bf16.msra.mxu3 %v377_v1 }
  0x39   :  { %575 = vmatmul.msk.bf16.vlgmr.msra.gmra.mxu2 %vm311_vm1, %v303_v33  ;;  %238 = vmatpush.bf16.msra.mxu1 %v228_v2 }
  0x3a   :  { %386 = vmatpush.bf16.msra.mxu3 %v376_v9 }
  0x3d   :  { %239 = vmatpush.bf16.msra.mxu1 %v227_v12 }
  0x3e   :  { %387 = vmatpush.bf16.msra.mxu3 %v375_v44 }
  0x41   :  { %240 = vmatpush.bf16.msra.mxu1 %v226_v20 }
  0x42   :  { %388 = vmatpush.bf16.msra.mxu3 %v374_v50 }
  0x45   :  { %241 = vmatpush.bf16.msra.mxu1 %v225_v29 }
  0x46   :  { %389 = vmatpush.bf16.msra.mxu3 %v373_v58 }
  0xad   :  { %v176_v55 = vpop.f32.mrf.mxu0 }
  0xae   :  { %v883_v56 = vadd.f32 %v176_v55, %v162_v48 }
  0xb0   :  { %v886_v61 = vmul.f32 0.70710677, %v883_v56  ;;  %v180_v23 = vmul.f32 0.5, %v883_v56 }
  0xb2   :  { %v182_v0 = vmul.f32 %v886_v61, %v886_v61 }
  0xb4   :  { %v890_v5 = vmin.f32 %v182_v0, 16.0 }
  0xb5   :  { %v178_v8 = vpop.f32.mrf.mxu0 }
  0xb6   :  { %v184_v10 = vmul.f32 2.1237322e-06, %v890_v5  ;;  %v195_v11 = vmul.f32 3.8918573e-05, %v890_v5 }
  0xb8   :  { %v185_v15 = vadd.f32 0.00028619796, %v184_v10  ;;  %v196_v16 = vadd.f32 0.001143296, %v195_v11 }
  0xba   :  { %v186_v18 = vmul.f32 %v185_v15, %v890_v5  ;;  %v197_v19 = vmul.f32 %v196_v16, %v890_v5 }
  0xbc   :  { %v324_v21 = vpop.f32.mrf.mxu2  ;;  %v187_v24 = vadd.f32 0.0036580483, %v186_v18  ;;  %v198_v25 = vadd.f32 0.014752088, %v197_v19 }
  0xbd   :  { %v897_v26 = vadd.f32 %v324_v21, %v310_v17 }
  0xbe   :  { %v199_v27 = vmul.f32 %v198_v25, %v890_v5  ;;  %v188_v30 = vmul.f32 %v187_v24, %v890_v5 }
  0xbf   :  { %v901_v28 = vmul.f32 0.70710677, %v897_v26  ;;  %v328_v44 = vmul.f32 0.5, %v897_v26 }
  0xc0   :  { %v200_v31 = vadd.f32 0.112945676, %v199_v27  ;;  %v189_v36 = vadd.f32 0.05243302, %v188_v30 }
  0xc1   :  { %v330_v32 = vmul.f32 %v901_v28, %v901_v28 }
  0xc2   :  { %v201_v33 = vmul.f32 %v200_v31, %v890_v5  ;;  %v190_v48 = vmul.f32 %v189_v36, %v890_v5 }
  0xc3   :  { %v907_v34 = vmin.f32 %v330_v32, 16.0 }
  0xc4   :  { %v326_v35 = vpop.f32.mrf.mxu2  ;;  %v202_v37 = vadd.f32 0.4994258, %v201_v33  ;;  %v191_v57 = vadd.f32 0.18741608, %v190_v48  ;;  %v233_v48 = vperm.slane %v880_v40, 1 }
  0xc5   :  { %v332_v42 = vmul.f32 2.1237322e-06, %v907_v34  ;;  %v343_v46 = vmul.f32 3.8918573e-05, %v907_v34 }
  0xc6   :  { %v203_v43 = vmul.f32 %v202_v37, %v890_v5  ;;  %v192_v0 = vmul.f32 %v191_v57, %v890_v5 }
  0xc7   :  { %v333_v47 = vadd.f32 0.00028619796, %v332_v42  ;;  %v344_v51 = vadd.f32 0.001143296, %v343_v46 }
  0xc8   :  { %v204_v49 = vadd.f32 1.0, %v203_v43  ;;  %v193_v7 = vadd.f32 1.1283791, %v192_v0 }
  0xc9   :  { %v334_v54 = vmul.f32 %v333_v47, %v907_v34  ;;  %v345_v55 = vmul.f32 %v344_v51, %v907_v34 }
  0xca   :  { %587 = vrcp.f32 %v204_v49  ;;  %v216_v8 = vand.u32 2147483648, %v204_v49  ;;  %v214_v10 = vand.u32 2147483647, %v204_v49  ;;  %vm210_vm3 = vweird.f32 %v204_v49 }
  0xcb   :  { %v346_v59 = vadd.f32 0.014752088, %v345_v55  ;;  %v335_v60 = vadd.f32 0.0036580483, %v334_v54  ;;  %v194_v15 = vmul.f32 %v193_v7, %v886_v61 }
  0xcc   :  { %v217_v5 = vor.u32 1.1754944e-38, %v216_v8  ;;  %vm215_vm5 = vcmp.eq.f32.partialorder %v214_v10, 8.507059e+37 }
  0xcd   :  { %v347_v62 = vmul.f32 %v346_v59, %v907_v34  ;;  %v336_v3 = vmul.f32 %v335_v60, %v907_v34 }
  0xcf   :  { %v348_v2 = vadd.f32 0.112945676, %v347_v62  ;;  %v337_v12 = vadd.f32 0.05243302, %v336_v3 }
  0xd0   :  { %v588_v63 = vpop.eup %587 }
  0xd1   :  { %v206_v1 = vmul.f32 %v588_v63, %v204_v49  ;;  %v349_v6 = vmul.f32 %v348_v2, %v907_v34  ;;  %vm211_vm2 = vweird.f32 %v588_v63  ;;  %v338_v19 = vmul.f32 %v337_v12, %v907_v34 }
  0xd2   :  { %vm212_vm4 = vmor %vm210_vm3, %vm211_vm2 }
  0xd3   :  { %v207_v4 = vsub.f32 1.0, %v206_v1  ;;  %v350_v11 = vadd.f32 0.4994258, %v349_v6  ;;  %v339_v22 = vadd.f32 0.18741608, %v338_v19 }
  0xd5   :  { %v208_v9 = vmul.f32 %v588_v63, %v207_v4  ;;  %v351_v14 = vmul.f32 %v350_v11, %v907_v34  ;;  %v340_v29 = vmul.f32 %v339_v22, %v907_v34 }
  0xd7   :  { %v209_v13 = vadd.f32 %v588_v63, %v208_v9  ;;  %v352_v17 = vadd.f32 1.0, %v351_v14  ;;  %v341_v33 = vadd.f32 1.1283791, %v340_v29 }
  0xd9   :  { %v213_v16 = vsel %vm212_vm4, %v588_v63, %v209_v13  ;;  %589 = vrcp.f32 %v352_v17  ;;  %v364_v32 = vand.u32 2147483648, %v352_v17  ;;  %v362_v36 = vand.u32 2147483647, %v352_v17 }
  0xda   :  { %v218_v18 = vsel %vm215_vm5, %v217_v5, %v213_v16  ;;  %vm358_vm7 = vweird.f32 %v352_v17  ;;  %v342_v39 = vmul.f32 %v341_v33, %v901_v28  ;;  %v270_v13 = vperm.slane %v880_v40, 2 }
  0xdb   :  { %v219_v20 = vmul.f32 %v218_v18, %v194_v15  ;;  %v365_v38 = vor.u32 1.1754944e-38, %v364_v32  ;;  %vm363_vm9 = vcmp.eq.f32.partialorder %v362_v36, 8.507059e+37  ;;  %vm551_vm5 = vcmask 0  }
  0xdd   :  { %v574_v21 = vclamps-f32 %v219_v20, 1.0 }
  0xdf   :  { %v222_v24 = vadd.f32 1.0, %v574_v21  ;;  %v590_v25 = vpop.eup %589 }
  0xe0   :  { %v354_v30 = vmul.f32 %v590_v25, %v352_v17  ;;  %vm359_vm6 = vweird.f32 %v590_v25  ;;  %v272_v17 = vperm.slane %v880_v40, 3 }
  0xe1   :  { %v223_v27 = vmul.f32 %v222_v24, %v180_v23  ;;  %vm360_vm8 = vmor %vm358_vm7, %vm359_vm6 }
  0xe2   :  { %v355_v61 = vsub.f32 1.0, %v354_v30 }
  0xe3   :  { %v224_v31 = vpack.c.bf16 %v223_v27, %v223_v27 }
  0xe4   :  { %v356_v35 = vmul.f32 %v590_v25, %v355_v61  ;;  %v418_v61 = vperm.slane %v880_v40, 6 }
  0xe5   :  { %242 = vmatmul.bf16.vlgmr.msra.gmra.mxu1 %v224_v31 }
  0xe6   :  { %v357_v37 = vadd.f32 %v590_v25, %v356_v35  ;;  %v420_v35 = vperm.slane %v880_v40, 7 }
  0xe8   :  { %v361_v41 = vsel %vm360_vm8, %v590_v25, %v357_v37 }
  0xe9   :  { %v366_v42 = vsel %vm363_vm9, %v365_v38, %v361_v41 }
  0xea   :  { %v367_v43 = vmul.f32 %v366_v42, %v342_v39 }
  0xec   :  { %v576_v34 = vclamps-f32 %v367_v43, 1.0 }
  0xee   :  { %v370_v45 = vadd.f32 1.0, %v576_v34 }
  0xf0   :  { %v371_v46 = vmul.f32 %v370_v45, %v328_v44 }
  0xf2   :  { %v372_v47 = vpack.c.bf16 %v371_v46, %v371_v46 }
  0xf4   :  { %390 = vmatmul.bf16.vlgmr.msra.gmra.mxu3 %v372_v47 }
 0x162   :  { %v243_v49 = vpop.f32.mrf.mxu1 }
 0x163   :  { %v244_v50 = vadd.f32 %v243_v49, %v233_v48 }
 0x165   :  { %v247_v51 = vadd.f32 %v244_v50, %v883_v56 }
 0x167   :  { %248 = vadd.xlane.f32.xlu0 %v247_v51  ;;  %v251_v28 = vmul.f32 %v247_v51, %v247_v51 }
 0x16a   :  { %v245_v52 = vpop.f32.mrf.mxu1 }
 0x16f   :  { %252 = vadd.xlane.f32.xlu0 %v251_v28 }
 0x177   :  { %v391_v54 = vpop.f32.mrf.mxu3 }
 0x178   :  { %v392_v55 = vadd.f32 %v391_v54, %v381_v53 }
 0x17a   :  { %v395_v57 = vadd.f32 %v392_v55, %v897_v26 }
 0x17c   :  { %396 = vadd.xlane.f32.xlu1 %v395_v57  ;;  %v399_v59 = vmul.f32 %v395_v57, %v395_v57 }
 0x17f   :  { %v393_v58 = vpop.f32.mrf.mxu3 }
 0x184   :  { %400 = vadd.xlane.f32.xlu1 %v399_v59 }
 0x1da   :  { %v249_v60 = vpop.xlane.xlu0 %248 }
 0x1db   :  { %v250_v62 = vmul.f32 0.0078125, %v249_v60 }
 0x1dd   :  { %v255_v0 = vmul.f32 %v250_v62, %v250_v62  ;;  %v257_v11 = vsub.f32 %v247_v51, %v250_v62 }
 0x1e2   :  { %v253_v63 = vpop.xlane.xlu0 %252 }
 0x1e3   :  { %v254_v1 = vmul.f32 0.0078125, %v253_v63 }
 0x1e5   :  { %v256_v56 = vsub.f32 %v254_v1, %v255_v0 }
 0x1e7   :  { %v258_v2 = vadd.f32 1e-05, %v256_v56 }
 0x1e9   :  { %591 = vrsqrt.f32 %v258_v2  ;;  %vm265_vm11 = vweird.f32 %v258_v2 }
 0x1ef   :  { %v592_v3 = vpop.eup %591  ;;  %v397_v6 = vpop.xlane.xlu1 %396 }
 0x1f0   :  { %v260_v4 = vmul.f32 %v592_v3, %v258_v2  ;;  %vm266_vm10 = vweird.f32 %v592_v3  ;;  %v398_v26 = vmul.f32 0.0078125, %v397_v6 }
 0x1f1   :  { %vm267_vm12 = vmor %vm265_vm11, %vm266_vm10 }
 0x1f2   :  { %v261_v7 = vmul.f32 %v592_v3, %v260_v4  ;;  %v403_v14 = vmul.f32 %v398_v26, %v398_v26  ;;  %v405_v31 = vsub.f32 %v395_v57, %v398_v26 }
 0x1f4   :  { %v262_v8 = vmul.f32 0.5, %v261_v7 }
 0x1f6   :  { %v263_v9 = vsub.f32 1.5, %v262_v8 }
 0x1f7   :  { %v401_v12 = vpop.xlane.xlu1 %400 }
 0x1f8   :  { %v264_v10 = vmul.f32 %v592_v3, %v263_v9  ;;  %v402_v5 = vmul.f32 0.0078125, %v401_v12 }
 0x1fa   :  { %v268_v15 = vsel %vm267_vm12, %v592_v3, %v264_v10  ;;  %v404_v18 = vsub.f32 %v402_v5, %v403_v14 }
 0x1fb   :  { %v269_v16 = vmul.f32 %v268_v15, %v257_v11 }
 0x1fc   :  { %v406_v20 = vadd.f32 1e-05, %v404_v18 }
 0x1fd   :  { %v271_v19 = vmul.f32 %v270_v13, %v269_v16 }
 0x1fe   :  { %593 = vrsqrt.f32 %v406_v20  ;;  %vm413_vm14 = vweird.f32 %v406_v20 }
 0x1ff   :  { %v273_v21 = vadd.f32 %v272_v17, %v271_v19 }
 0x201   :  { %v422_v22 = vpack.c.bf16 %v273_v21, %v273_v21 }
 0x203   :  { %431 = vmatpush.bf16.xpose.msrb.mxu0 %v422_v22  ;;  %444 = vmatpush.bf16.xpose.msrb.mxu2 %v422_v22 }
 0x204   :  { %v594_v23 = vpop.eup %593 }
 0x205   :  { %v408_v24 = vmul.f32 %v594_v23, %v406_v20  ;;  %vm414_vm13 = vweird.f32 %v594_v23 }
 0x206   :  { %vm415_vm15 = vmor %vm413_vm14, %vm414_vm13 }
 0x207   :  { %v409_v25 = vmul.f32 %v594_v23, %v408_v24 }
 0x209   :  { %v410_v27 = vmul.f32 0.5, %v409_v25 }
 0x20a   :  { %445 = vmatmul.bf16.vlgmr.msrb.gmra.mxu2 %v422_v22 }
 0x20b   :  { %v411_v29 = vsub.f32 1.5, %v410_v27 }
 0x20d   :  { %v412_v30 = vmul.f32 %v594_v23, %v411_v29 }
 0x20f   :  { %v416_v32 = vsel %vm415_vm15, %v594_v23, %v412_v30 }
 0x210   :  { %v417_v33 = vmul.f32 %v416_v32, %v405_v31 }
 0x212   :  { %v419_v36 = vmul.f32 %v418_v61, %v417_v33 }
 0x214   :  { %v421_v37 = vadd.f32 %v420_v35, %v419_v36 }
 0x216   :  { %v423_v38 = vpack.c.bf16 %v421_v37, %v421_v37 }
 0x218   :  { %432 = vmatmul.bf16.vlgmr.msrb.gmra.mxu0 %v423_v38 }
 0x219   :  { %457 = vmatpush.bf16.xpose.msra.mxu0 %v423_v38 }
 0x228   :  { %458 = vmatmul.bf16.vlgmr.msra.gmra.mxu0 %v423_v38 }
 0x28d   :  { %v446_v39 = vpop.f32.mrf.mxu2 }
 0x295   :  { %v448_v41 = vpop.f32.mrf.mxu2  ;;  %v433_v42 = vpop.f32.mrf.mxu0 }
 0x296   :  { %v489_v43 = vsel %vm464_vm0, %v433_v42, -inf }
 0x297   :  { %490 = vmax.xlane.f32.xlu0 %v489_v43  ;;  %v501_v58 = vrot.slane %v489_v43, 4 }
 0x299   :  { %v502_v59 = vmax.f32 %v489_v43, %v501_v58 }
 0x29b   :  { %v503_v60 = vrot.slane %v502_v59, 2 }
 0x29d   :  { %v435_v34 = vpop.f32.mrf.mxu0  ;;  %v504_v62 = vmax.f32 %v502_v59, %v503_v60 }
 0x29f   :  { %v505_v63 = vrot.slane %v504_v62, 1 }
 0x2a1   :  { %v506_v0 = vmax.f32 %v504_v62, %v505_v63 }
 0x2a3   :  { %v507_v1 = vsub.f32 %v433_v42, %v506_v0 }
 0x2a5   :  { %v459_v44 = vpop.f32.mrf.mxu0  ;;  %v508_v56 = vmul.f32 1.442695, %v507_v1 }
 0x2a6   :  { %v460_v45 = vadd.f32 %v459_v44, %v446_v39 }
 0x2a8   :  { %v463_v46 = vmul.f32 0.5, %v460_v45 }
 0x2aa   :  { %v465_v47 = vsel %vm464_vm0, %v463_v46, -inf }
 0x2ab   :  { %466 = vmax.xlane.f32.xlu2 %v465_v47 }
 0x2ad   :  { %v461_v40 = vpop.f32.mrf.mxu0 }
 0x30a   :  { %v936_v48 = vpop.xlane.xlu0 %490 }
 0x30b   :  { %v492_v49 = vsub.f32 %v433_v42, %v936_v48 }
 0x30d   :  { %v493_v50 = vmul.f32 1.442695, %v492_v49 }
 0x30f   :  { %595 = vpow2.f32 %v493_v50 }
 0x315   :  { %v596_v51 = vpop.eup %595 }
 0x316   :  { %v495_v52 = vsel %vm464_vm0, %v596_v51, 0.0 }
 0x317   :  { %496 = vadd.xlane.f32.xlu1 %v495_v52 }
 0x31e   :  { %v467_v28 = vpop.xlane.xlu2 %466 }
 0x31f   :  { %v468_v53 = vsub.f32 %v463_v46, %v467_v28 }
 0x321   :  { %v469_v54 = vmul.f32 1.442695, %v468_v53 }
 0x323   :  { %597 = vpow2.f32 %v469_v54 }
 0x324   :  { %599 = vpow2.f32 %v508_v56 }
 0x329   :  { %v598_v55 = vpop.eup %597 }
 0x32a   :  { %v471_v57 = vsel %vm464_vm0, %v598_v55, 0.0  ;;  %v600_v2 = vpop.eup %599 }
 0x32b   :  { %472 = vadd.xlane.f32.xlu2 %v471_v57  ;;  %v510_v3 = vsel %vm464_vm0, %v600_v2, 0.0 }
 0x32c   :  { %v511_v4 = vrot.slane %v510_v3, 4 }
 0x32e   :  { %v512_v6 = vadd.f32 %v511_v4, %v510_v3 }
 0x330   :  { %v513_v8 = vrot.slane %v512_v6, 2 }
 0x332   :  { %v514_v9 = vadd.f32 %v513_v8, %v512_v6 }
 0x334   :  { %v515_v12 = vrot.slane %v514_v9, 1 }
 0x336   :  { %v516_v16 = vadd.f32 %v515_v12, %v514_v9 }
 0x38a   :  { %v497_v37 = vpop.xlane.xlu1 %496 }
 0x39e   :  { %v473_v7 = vpop.xlane.xlu2 %472 }
 0x39f   :  { %601 = vrcp.f32 %v473_v7  ;;  %v485_v13 = vand.u32 2147483648, %v473_v7  ;;  %v483_v5 = vand.u32 2147483647, %v473_v7  ;;  %vm479_vm2 = vweird.f32 %v473_v7 }
 0x3a0   :  { %603 = vlog2.f32 %v516_v16 }
 0x3a1   :  { %v486_v17 = vor.u32 1.1754944e-38, %v485_v13  ;;  %vm484_vm4 = vcmp.eq.f32.partialorder %v483_v5, 8.507059e+37  ;;  %605 = vlog2.f32 %v497_v37 }
 0x3a5   :  { %v602_v26 = vpop.eup %601 }
 0x3a6   :  { %v475_v10 = vmul.f32 %v602_v26, %v473_v7  ;;  %vm480_vm1 = vweird.f32 %v602_v26  ;;  %v604_v27 = vpop.eup %603 }
 0x3a7   :  { %vm481_vm3 = vmor %vm479_vm2, %vm480_vm1  ;;  %v518_v30 = vmul.f32 0.6931472, %v604_v27  ;;  %v606_v38 = vpop.eup %605 }
 0x3a8   :  { %v476_v11 = vsub.f32 1.0, %v475_v10  ;;  %v499_v39 = vmul.f32 0.6931472, %v606_v38 }
 0x3a9   :  { %v519_v32 = vadd.f32 %v518_v30, %v506_v0 }
 0x3aa   :  { %v477_v14 = vmul.f32 %v602_v26, %v476_v11  ;;  %v500_v41 = vadd.f32 %v499_v39, %v936_v48 }
 0x3ac   :  { %v478_v15 = vadd.f32 %v602_v26, %v477_v14 }
 0x3ae   :  { %v482_v18 = vsel %vm481_vm3, %v602_v26, %v478_v15 }
 0x3af   :  { %v487_v19 = vsel %vm484_vm4, %v486_v17, %v482_v18 }
 0x3b0   :  { %v488_v20 = vmul.f32 %v598_v55, %v487_v19 }
 0x3b2   :  { %v520_v21 = vmul.f32 %v488_v20, %v433_v42  ;;  %v536_v22 = vsel %vm464_vm0, %v488_v20, 0.0  ;;  %v530_v42 = vrot.slane %v500_v41, 4 }
 0x3b3   :  { %v537_v23 = vrot.slane %v536_v22, 4 }
 0x3b4   :  { %v521_v24 = vsel %vm464_vm0, %v520_v21, 0.0  ;;  %v531_v43 = vadd.f32 %v530_v42, %v500_v41 }
 0x3b5   :  { %v538_v25 = vadd.f32 %v537_v23, %v536_v22  ;;  %522 = vadd.xlane.f32.xlu2 %v521_v24 }
 0x3b6   :  { %v532_v44 = vrot.slane %v531_v43, 2 }
 0x3b7   :  { %v539_v29 = vrot.slane %v538_v25, 2 }
 0x3b8   :  { %v533_v47 = vadd.f32 %v532_v44, %v531_v43 }
 0x3b9   :  { %v540_v31 = vadd.f32 %v539_v29, %v538_v25 }
 0x3ba   :  { %v534_v50 = vrot.slane %v533_v47, 1 }
 0x3bb   :  { %v541_v61 = vrot.slane %v540_v31, 1 }
 0x3bc   :  { %v535_v28 = vadd.f32 %v534_v50, %v533_v47 }
 0x3bd   :  { %v542_v33 = vadd.f32 %v541_v61, %v540_v31 }
 0x3bf   :  { %v543_v35 = vmul.f32 %v542_v33, %v519_v32 }
 0x3c1   :  { %v544_v36 = vsel %vm464_vm0, %v543_v35, 0.0 }
 0x3c2   :  { %545 = vadd.xlane.f32.xlu0 %v544_v36 }
 0x428   :  { %v523_v34 = vpop.xlane.xlu2 %522 }
 0x429   :  { %v524_v45 = vrot.slane %v523_v34, 4 }
 0x42b   :  { %v525_v46 = vadd.f32 %v524_v45, %v523_v34 }
 0x42d   :  { %v526_v40 = vrot.slane %v525_v46, 2 }
 0x42f   :  { %v527_v49 = vadd.f32 %v526_v40, %v525_v46 }
 0x431   :  { %v528_v51 = vrot.slane %v527_v49, 1 }
 0x433   :  { %v529_v52 = vadd.f32 %v528_v51, %v527_v49 }
 0x435   :  { %v546_v53 = vpop.xlane.xlu0 %545  ;;  %v548_v54 = vmul.f32 2.0, %v529_v52 }
 0x436   :  { %v547_v55 = vadd.f32 %v546_v53, %v535_v28 }
 0x438   :  { %v549_v48 = vsub.f32 %v547_v55, %v548_v54 }
 0x43a   :  { %v550_v57 = vmul.f32 0.0625, %v549_v48 }
 0x43c   :  { %552 = vst.msk [vmem:[#allocation14] sm:$0x1] %vm551_vm5, %v550_v57 }
 0x43d   :  { %563 = dma.vmem_to_hbm [thread:$0]  %s559_s6, 16, %s561_s12, [#allocation4]  }
 0x43e   :  { %807 = dma.done.wait [#allocation4], 16  }
 0x43f   :  { %808 = vsyncadd [#allocation4], 4294967280 }
 0x440   :  { %568 = vsyncpa [#allocation3], 1 }
 0x441   :  { %569 = vsyncpa [#allocation6], 1 }
 0x442   :  { %570 = vsyncpa [#allocation9], 1 }
 0x443   :  { %571 = vsyncpa [#allocation12], 1 }
 0x444   :  { %572 = vsyncpa [#allocation4], 1 }

</bundles_post_ra>
